<compile_context>
chip_gen: v7x
topology: tpu7x:2x2x1
jax: 0.10.0
libtpu: 0.0.40
codegen_flags: <defaults>
</compile_context>

<pallas_src>
import jax
import jax.numpy as jnp
import numpy as np
from jax.experimental import pallas as pl
from jax.experimental.pallas import tpu as pltpu

_LANE = 128


def _round_up(n, m):
    return ((n + m - 1) // m) * m


def _cdiv(a, b):
    return -(-a // b)


def _make_kernel(n_layers):
    """Fused LambdaNN forward kernel for a static layer count."""
    n_f = 2 * n_layers  # (W, b) pairs per sub-net

    def kernel(x_ref, t_ref, *refs):
        out_ref = refs[-1]
        prefs = refs[:-1]
        feat = prefs[:n_f]
        tparams = prefs[n_f:2 * n_f]
        shared = prefs[2 * n_f:]  # (W0x, W0t, b0, W1, b1, ...)

        def dense(h, w_ref, b_ref, relu):
            # bf16 MXU inputs, f32 accumulate, f32 bias/ReLU.
            z = jnp.dot(h.astype(jnp.bfloat16), w_ref[...],
                        preferred_element_type=jnp.float32) + b_ref[...]
            return jnp.maximum(z, 0.0) if relu else z

        # ---- feature_net: Linear/ReLU stack, last layer linear-only --------
        h = x_ref[...]
        for i in range(n_layers):
            h = dense(h, feat[2 * i], feat[2 * i + 1], relu=(i + 1 < n_layers))
        xf = h

        # ---- time_net -------------------------------------------------------
        # First layer has K=1: VPU broadcast (t * w_row + b) in f32, not a
        # degenerate 1-lane MXU matmul.
        w0 = tparams[0][...]  # (1, H) f32
        b0 = tparams[1][...]  # (1, H) f32
        h = t_ref[...] * w0 + b0  # (TB,1)*(1,H) -> (TB,H)
        if n_layers > 1:
            h = jnp.maximum(h, 0.0)
        for i in range(1, n_layers):
            h = dense(h, tparams[2 * i], tparams[2 * i + 1],
                      relu=(i + 1 < n_layers))
        tf = h

        # ---- shared_net ------------------------------------------------------
        # Layer 0: concat([xf, tf], -1) @ W0 == xf @ W0x + tf @ W0t
        h = (jnp.dot(xf.astype(jnp.bfloat16), shared[0][...],
                     preferred_element_type=jnp.float32)
             + jnp.dot(tf.astype(jnp.bfloat16), shared[1][...],
                       preferred_element_type=jnp.float32)
             + shared[2][...])
        rest = shared[3:]
        n_rest = len(rest) // 2
        if n_rest > 0:
            h = jnp.maximum(h, 0.0)
        for i in range(n_rest):
            h = dense(h, rest[2 * i], rest[2 * i + 1], relu=(i + 1 < n_rest))

        # Softplus (numerically stable, f32): max(z,0) + log1p(exp(-|z|))
        z = h
        out_ref[...] = jnp.maximum(z, 0.0) + jnp.log1p(jnp.exp(-jnp.abs(z)))

    return kernel


def _pad2(a, rows, cols, dtype=jnp.float32):
    """Zero-pad a 2-D array up to (rows, cols) and cast."""
    p = jnp.pad(a.astype(jnp.float32),
                ((0, rows - a.shape[0]), (0, cols - a.shape[1])))
    return p.astype(dtype)


def _pad_params(params, n_layers, d_in, d_hid, d_out):
    """Zero-pad hidden/output widths to lane multiples (mathematically exact:
    padded units carry zero weights + zero bias through the ReLU stack).
    Matmul weights -> bf16; biases and the K=1 time-layer weight stay f32."""
    H = _round_up(d_hid, _LANE)
    O = _round_up(d_out, _LANE)
    BF = jnp.bfloat16
    n_f = 2 * n_layers
    feat, tparams, shared = params[:n_f], params[n_f:2 * n_f], params[2 * n_f:]

    out = []
    for i in range(n_layers):  # feature_net
        w, b = feat[2 * i], feat[2 * i + 1]
        in_p = d_in if i == 0 else H
        out += [_pad2(w, in_p, H, BF), _pad2(b, 1, H)]
    for i in range(n_layers):  # time_net (first layer stays f32: VPU broadcast)
        w, b = tparams[2 * i], tparams[2 * i + 1]
        if i == 0:
            out += [_pad2(w, 1, H), _pad2(b, 1, H)]
        else:
            out += [_pad2(w, H, H, BF), _pad2(b, 1, H)]
    # shared_net: (W0x, W0t, b0, W1, b1, ...)
    out0 = O if n_layers == 1 else H
    out += [_pad2(shared[0], H, out0, BF), _pad2(shared[1], H, out0, BF),
            _pad2(shared[2], 1, out0)]
    rest = shared[3:]
    n_rest = len(rest) // 2
    for i in range(n_rest):
        w, b = rest[2 * i], rest[2 * i + 1]
        o = O if i + 1 == n_rest else H
        out += [_pad2(w, H, o, BF), _pad2(b, 1, o)]
    return tuple(out)


def _vmem_budget_bytes():
    """~75% of physical VMEM: 96 MiB on v5e/v6e (128 MiB), 48 MiB on v7x (64 MiB)."""
    try:
        cap = int(pltpu.get_tpu_info().vmem_capacity_bytes)
    except Exception:
        cap = 64 * 1024 * 1024  # conservative fallback (v7x-sized)
    return min((cap * 3) // 4, 100 * 1024 * 1024)


def lambdann_forward(x, t, params, n_layers, d_in, d_hid, d_out, tile_b=512):
    """Glue wrapper: reshape t, match batch sizes, tile the batch, call Pallas."""
    x = x.astype(jnp.float32)
    t2 = t.reshape(-1, 1).astype(jnp.float32)
    if x.shape[0] != t2.shape[0]:
        k = t2.shape[0] // x.shape[0]
        assert k * x.shape[0] == t2.shape[0], (
            "t batch must be an exact multiple of x batch")
        # repeat_interleave ordering (matches PyTorch x.repeat_interleave(k, 0)).
        # TODO(synk): avoid materializing the repeated x in HBM — run
        # feature_net once per unique x row (two-stage kernel) and only run
        # time_net + shared_net per (x, t) pair.
        x = jnp.repeat(x, k, axis=0)

    B = x.shape[0]
    H = _round_up(d_hid, _LANE)
    O = _round_up(d_out, _LANE)

    # ---- batch tile: balanced tiles (minimal padding), sublane-aligned, and
    # >=2 grid steps when B is large enough so v7x's second TensorCore is used.
    n_tiles = max(1, _cdiv(B, tile_b))
    if n_tiles == 1 and B > 256:
        n_tiles = 2
    tb = _round_up(_cdiv(B, n_tiles), 8)

    kparams = _pad_params(params, n_layers, d_in, d_hid, d_out)

    # ---- VMEM footprint -> limit (and shrink tb if activations overflow).
    param_bytes = sum(int(p.size) * p.dtype.itemsize for p in kparams)

    def _footprint(tb_):
        act = 2 * tb_ * (x.shape[1] + 1 + O) * 4      # double-buffered x/t/out tiles
        live = 8 * tb_ * max(H, O) * 4                # live f32 intermediates + bf16 casts
        return param_bytes + act + live + (2 << 20)   # + margin for Mosaic scratch

    budget = _vmem_budget_bytes()
    while _footprint(tb) > budget and tb > 128:
        tb = max(128, _round_up(tb // 2, 8))
    # TODO(synk): if param_bytes alone exceeds the budget (huge H / deep nets,
    # esp. on v7x's 64 MiB VMEM), stop keeping all weights resident and stream
    # them per layer with pltpu.emit_pipeline instead.
    vmem_limit = int(min(max(_footprint(tb), 16 * 1024 * 1024), budget))

    B_pad = _round_up(B, tb)
    if B_pad != B:
        x = jnp.pad(x, ((0, B_pad - B), (0, 0)))
        t2 = jnp.pad(t2, ((0, B_pad - B), (0, 0)))

    grid = (B_pad // tb,)
    # Activations: tiled along batch, pipelined (default double-buffering).
    in_specs = [pl.BlockSpec((tb, x.shape[1]), lambda i: (i, 0)),
                pl.BlockSpec((tb, 1), lambda i: (i, 0))]
    # Weights/biases: full-extent blocks with a constant index_map -> DMA'd
    # once and VMEM-resident; Buffered(1) because a constant block gains
    # nothing from double-buffering (halves resident weight VMEM).
    for p in kparams:
        in_specs.append(pl.BlockSpec(p.shape, lambda i: (0, 0),
                                     pipeline_mode=pl.Buffered(1)))
    # Lane-dense output store (padded O columns sliced off afterwards).
    out_spec = pl.BlockSpec((tb, O), lambda i: (i, 0))

    # Advisory cost estimate (bf16 arrays are exactly the MXU weights).
    mm = sum(int(p.shape[0]) * int(p.shape[1]) for p in kparams
             if p.dtype == jnp.bfloat16)
    cost = pl.CostEstimate(
        flops=int(2 * B_pad * mm),
        transcendentals=int(2 * B_pad * O),
        bytes_accessed=int(4 * B_pad * (x.shape[1] + 1 + O) + param_bytes))

    out = pl.pallas_call(
        _make_kernel(n_layers),
        out_shape=jax.ShapeDtypeStruct((B_pad, O), jnp.float32),
        grid=grid,
        in_specs=in_specs,
        out_specs=out_spec,
        compiler_params=pltpu.CompilerParams(
            dimension_semantics=("parallel",),   # shard batch tiles across TCs (v7x)
            vmem_limit_bytes=vmem_limit),
        cost_estimate=cost,
    )(x, t2, *kparams)
    return out[:B, :d_out]


def init_params(key, d_in, d_out, d_hid, n_layers):
    """Deterministic Linear params (Kaiming-uniform-ish, like nn.Linear)."""

    def linear(k, fan_in, fan_out):
        k1, k2 = jax.random.split(k)
        bound = 1.0 / np.sqrt(fan_in)
        w = jax.random.uniform(k1, (fan_in, fan_out), jnp.float32, -bound, bound)
        b = jax.random.uniform(k2, (1, fan_out), jnp.float32, -bound, bound)
        return w, b

    keys = iter(jax.random.split(key, 3 * n_layers + 1))
    params = []
    # feature_net: d_in -> d_hid -> ... -> d_hid
    for ii in range(n_layers):
        w, b = linear(next(keys), d_in if ii == 0 else d_hid, d_hid)
        params += [w, b]
    # time_net: 1 -> d_hid -> ... -> d_hid
    for ii in range(n_layers):
        w, b = linear(next(keys), 1 if ii == 0 else d_hid, d_hid)
        params += [w, b]
    # shared_net: 2*d_hid -> d_hid ... -> d_out (first layer split into Wx, Wt)
    for ii in range(n_layers):
        fan_in = 2 * d_hid if ii == 0 else d_hid
        fan_out = d_out if ii + 1 == n_layers else d_hid
        w, b = linear(next(keys), fan_in, fan_out)
        if ii == 0:
            params += [w[:d_hid, :], w[d_hid:, :], b]
        else:
            params += [w, b]
    return tuple(params)


def reference_forward(x, t, params, n_layers, d_hid, d_out):
    """Pure-JAX reference mirroring PyTorch eval-mode semantics with the same
    mixed precision as the kernel (bf16 MXU inputs, f32 accumulate/elementwise)."""
    x = x.astype(jnp.float32)
    t2 = t.reshape(-1, 1).astype(jnp.float32)
    if x.shape[0] != t2.shape[0]:
        x = jnp.repeat(x, t2.shape[0] // x.shape[0], axis=0)
    n_f = 2 * n_layers
    feat, tparams, shared = params[:n_f], params[n_f:2 * n_f], params[2 * n_f:]

    def dot16(a, w):
        return jnp.dot(a.astype(jnp.bfloat16), w.astype(jnp.bfloat16),
                       preferred_element_type=jnp.float32)

    # feature_net
    h = x
    for i in range(n_layers):
        h = dot16(h, feat[2 * i]) + feat[2 * i + 1]
        if i + 1 < n_layers:
            h = jnp.maximum(h, 0.0)
    xf = h
    # time_net (first layer f32 broadcast, like the kernel)
    h = t2 * tparams[0] + tparams[1]
    if n_layers > 1:
        h = jnp.maximum(h, 0.0)
    for i in range(1, n_layers):
        h = dot16(h, tparams[2 * i]) + tparams[2 * i + 1]
        if i + 1 < n_layers:
            h = jnp.maximum(h, 0.0)
    tf = h
    # shared_net
    h = dot16(xf, shared[0]) + dot16(tf, shared[1]) + shared[2]
    rest = shared[3:]
    n_rest = len(rest) // 2
    if n_rest > 0:
        h = jnp.maximum(h, 0.0)
    for i in range(n_rest):
        h = dot16(h, rest[2 * i]) + rest[2 * i + 1]
        if i + 1 < n_rest:
            h = jnp.maximum(h, 0.0)
    return jnp.maximum(h, 0.0) + jnp.log1p(jnp.exp(-jnp.abs(h)))


if __name__ == "__main__":
    B, D_IN, D_OUT, D_HID, N_LAYERS = 8, 16, 4, 32, 2

    root = jax.random.PRNGKey(0)
    k_param, k_x, k_t = jax.random.split(root, 3)
    params = init_params(k_param, D_IN, D_OUT, D_HID, N_LAYERS)

    # Case 1: matching x / t batch sizes.
    x = jax.random.normal(k_x, (B, D_IN), jnp.float32)
    t = jax.random.normal(k_t, (B,), jnp.float32)
    out = jax.block_until_ready(
        lambdann_forward(x, t, params, N_LAYERS, D_IN, D_HID, D_OUT))
    ref = reference_forward(x, t, params, N_LAYERS, D_HID, D_OUT)
    np.testing.assert_allclose(np.asarray(out), np.asarray(ref),
                               rtol=1e-2, atol=1e-2)

    # Case 2: repeat_interleave path (x batch < t batch).
    x2 = x[: B // 2]
    out2 = jax.block_until_ready(
        lambdann_forward(x2, t, params, N_LAYERS, D_IN, D_HID, D_OUT))
    ref2 = reference_forward(x2, t, params, N_LAYERS, D_HID, D_OUT)
    np.testing.assert_allclose(np.asarray(out2), np.asarray(ref2),
                               rtol=1e-2, atol=1e-2)

    print("KERNEL_OK")
</pallas_src>

<mosaic_0001>
module attributes {stable_mosaic.version = 11 : i64} {
  func.func @kernel(%arg0: i32, %arg1: memref<8x16xf32, #tpu.memory_space<vmem>>, %arg2: memref<8x1xf32, #tpu.memory_space<vmem>>, %arg3: memref<16x128xbf16, #tpu.memory_space<vmem>>, %arg4: memref<1x128xf32, #tpu.memory_space<vmem>>, %arg5: memref<128x128xbf16, #tpu.memory_space<vmem>>, %arg6: memref<1x128xf32, #tpu.memory_space<vmem>>, %arg7: memref<1x128xf32, #tpu.memory_space<vmem>>, %arg8: memref<1x128xf32, #tpu.memory_space<vmem>>, %arg9: memref<128x128xbf16, #tpu.memory_space<vmem>>, %arg10: memref<1x128xf32, #tpu.memory_space<vmem>>, %arg11: memref<128x128xbf16, #tpu.memory_space<vmem>>, %arg12: memref<128x128xbf16, #tpu.memory_space<vmem>>, %arg13: memref<1x128xf32, #tpu.memory_space<vmem>>, %arg14: memref<128x128xbf16, #tpu.memory_space<vmem>>, %arg15: memref<1x128xf32, #tpu.memory_space<vmem>>, %arg16: memref<8x128xf32, #tpu.memory_space<vmem>>) attributes {dimension_semantics = [#tpu.dimension_semantics<parallel>], iteration_bounds = array<i64: 1>, scalar_prefetch = 0 : i64, scratch_operands = 0 : i64, tpu.core_type = #tpu.core_type<tc>, window_params = [{transform_indices = @transform_0, window_bounds = array<i64: 8, 16>}, {transform_indices = @transform_1, window_bounds = array<i64: 8, 1>}, {pipeline_mode = #tpu.pipeline_mode<synchronous>, transform_indices = @transform_2, window_bounds = array<i64: 16, 128>}, {pipeline_mode = #tpu.pipeline_mode<synchronous>, transform_indices = @transform_3, window_bounds = array<i64: 1, 128>}, {pipeline_mode = #tpu.pipeline_mode<synchronous>, transform_indices = @transform_4, window_bounds = array<i64: 128, 128>}, {pipeline_mode = #tpu.pipeline_mode<synchronous>, transform_indices = @transform_5, window_bounds = array<i64: 1, 128>}, {pipeline_mode = #tpu.pipeline_mode<synchronous>, transform_indices = @transform_6, window_bounds = array<i64: 1, 128>}, {pipeline_mode = #tpu.pipeline_mode<synchronous>, transform_indices = @transform_7, window_bounds = array<i64: 1, 128>}, {pipeline_mode = #tpu.pipeline_mode<synchronous>, transform_indices = @transform_8, window_bounds = array<i64: 128, 128>}, {pipeline_mode = #tpu.pipeline_mode<synchronous>, transform_indices = @transform_9, window_bounds = array<i64: 1, 128>}, {pipeline_mode = #tpu.pipeline_mode<synchronous>, transform_indices = @transform_10, window_bounds = array<i64: 128, 128>}, {pipeline_mode = #tpu.pipeline_mode<synchronous>, transform_indices = @transform_11, window_bounds = array<i64: 128, 128>}, {pipeline_mode = #tpu.pipeline_mode<synchronous>, transform_indices = @transform_12, window_bounds = array<i64: 1, 128>}, {pipeline_mode = #tpu.pipeline_mode<synchronous>, transform_indices = @transform_13, window_bounds = array<i64: 128, 128>}, {pipeline_mode = #tpu.pipeline_mode<synchronous>, transform_indices = @transform_14, window_bounds = array<i64: 1, 128>}, {transform_indices = @transform_15, window_bounds = array<i64: 8, 128>}]} {
    %c0 = arith.constant 0 : index
    %c0_0 = arith.constant 0 : index
    %0 = vector.load %arg1[%c0, %c0_0] : memref<8x16xf32, #tpu.memory_space<vmem>>, vector<8x16xf32>
    %1 = arith.truncf %0 : vector<8x16xf32> to vector<8x16xbf16>
    %c0_1 = arith.constant 0 : index
    %c0_2 = arith.constant 0 : index
    %2 = vector.load %arg3[%c0_1, %c0_2] : memref<16x128xbf16, #tpu.memory_space<vmem>>, vector<16x128xbf16>
    %cst = arith.constant dense<0.000000e+00> : vector<8x128xf32>
    %3 = tpu.matmul %1, %2, %cst {dimension_numbers = #tpu.dot_dimension_numbers<[1], [0], [0], [1], [0, 0, 1, 1], [], []>} : vector<8x16xbf16>, vector<16x128xbf16>, vector<8x128xf32> -> vector<8x128xf32>
    %c0_3 = arith.constant 0 : index
    %c0_4 = arith.constant 0 : index
    %4 = vector.load %arg4[%c0_3, %c0_4] : memref<1x128xf32, #tpu.memory_space<vmem>>, vector<1x128xf32>
    %5 = vector.broadcast %4 : vector<1x128xf32> to vector<8x128xf32>
    %6 = arith.addf %3, %5 : vector<8x128xf32>
    %cst_5 = arith.constant 0.000000e+00 : f32
    %7 = vector.broadcast %cst_5 : f32 to vector<8x128xf32>
    %8 = arith.maximumf %6, %7 : vector<8x128xf32>
    %9 = arith.truncf %8 : vector<8x128xf32> to vector<8x128xbf16>
    %c0_6 = arith.constant 0 : index
    %c0_7 = arith.constant 0 : index
    %10 = vector.load %arg5[%c0_6, %c0_7] : memref<128x128xbf16, #tpu.memory_space<vmem>>, vector<128x128xbf16>
    %cst_8 = arith.constant dense<0.000000e+00> : vector<8x128xf32>
    %11 = tpu.matmul %9, %10, %cst_8 {dimension_numbers = #tpu.dot_dimension_numbers<[1], [0], [0], [1], [0, 0, 1, 1], [], []>} : vector<8x128xbf16>, vector<128x128xbf16>, vector<8x128xf32> -> vector<8x128xf32>
    %c0_9 = arith.constant 0 : index
    %c0_10 = arith.constant 0 : index
    %12 = vector.load %arg6[%c0_9, %c0_10] : memref<1x128xf32, #tpu.memory_space<vmem>>, vector<1x128xf32>
    %13 = vector.broadcast %12 : vector<1x128xf32> to vector<8x128xf32>
    %14 = arith.addf %11, %13 : vector<8x128xf32>
    %c0_11 = arith.constant 0 : index
    %c0_12 = arith.constant 0 : index
    %15 = vector.load %arg7[%c0_11, %c0_12] : memref<1x128xf32, #tpu.memory_space<vmem>>, vector<1x128xf32>
    %c0_13 = arith.constant 0 : index
    %c0_14 = arith.constant 0 : index
    %16 = vector.load %arg8[%c0_13, %c0_14] : memref<1x128xf32, #tpu.memory_space<vmem>>, vector<1x128xf32>
    %c0_15 = arith.constant 0 : index
    %c0_16 = arith.constant 0 : index
    %17 = vector.load %arg2[%c0_15, %c0_16] : memref<8x1xf32, #tpu.memory_space<vmem>>, vector<8x1xf32>
    %18 = vector.broadcast %17 : vector<8x1xf32> to vector<8x128xf32>
    %19 = vector.broadcast %15 : vector<1x128xf32> to vector<8x128xf32>
    %20 = arith.mulf %18, %19 : vector<8x128xf32>
    %21 = vector.broadcast %16 : vector<1x128xf32> to vector<8x128xf32>
    %22 = arith.addf %20, %21 : vector<8x128xf32>
    %cst_17 = arith.constant 0.000000e+00 : f32
    %23 = vector.broadcast %cst_17 : f32 to vector<8x128xf32>
    %24 = arith.maximumf %22, %23 : vector<8x128xf32>
    %25 = arith.truncf %24 : vector<8x128xf32> to vector<8x128xbf16>
    %c0_18 = arith.constant 0 : index
    %c0_19 = arith.constant 0 : index
    %26 = vector.load %arg9[%c0_18, %c0_19] : memref<128x128xbf16, #tpu.memory_space<vmem>>, vector<128x128xbf16>
    %cst_20 = arith.constant dense<0.000000e+00> : vector<8x128xf32>
    %27 = tpu.matmul %25, %26, %cst_20 {dimension_numbers = #tpu.dot_dimension_numbers<[1], [0], [0], [1], [0, 0, 1, 1], [], []>} : vector<8x128xbf16>, vector<128x128xbf16>, vector<8x128xf32> -> vector<8x128xf32>
    %c0_21 = arith.constant 0 : index
    %c0_22 = arith.constant 0 : index
    %28 = vector.load %arg10[%c0_21, %c0_22] : memref<1x128xf32, #tpu.memory_space<vmem>>, vector<1x128xf32>
    %29 = vector.broadcast %28 : vector<1x128xf32> to vector<8x128xf32>
    %30 = arith.addf %27, %29 : vector<8x128xf32>
    %31 = arith.truncf %14 : vector<8x128xf32> to vector<8x128xbf16>
    %c0_23 = arith.constant 0 : index
    %c0_24 = arith.constant 0 : index
    %32 = vector.load %arg11[%c0_23, %c0_24] : memref<128x128xbf16, #tpu.memory_space<vmem>>, vector<128x128xbf16>
    %cst_25 = arith.constant dense<0.000000e+00> : vector<8x128xf32>
    %33 = tpu.matmul %31, %32, %cst_25 {dimension_numbers = #tpu.dot_dimension_numbers<[1], [0], [0], [1], [0, 0, 1, 1], [], []>} : vector<8x128xbf16>, vector<128x128xbf16>, vector<8x128xf32> -> vector<8x128xf32>
    %34 = arith.truncf %30 : vector<8x128xf32> to vector<8x128xbf16>
    %c0_26 = arith.constant 0 : index
    %c0_27 = arith.constant 0 : index
    %35 = vector.load %arg12[%c0_26, %c0_27] : memref<128x128xbf16, #tpu.memory_space<vmem>>, vector<128x128xbf16>
    %cst_28 = arith.constant dense<0.000000e+00> : vector<8x128xf32>
    %36 = tpu.matmul %34, %35, %cst_28 {dimension_numbers = #tpu.dot_dimension_numbers<[1], [0], [0], [1], [0, 0, 1, 1], [], []>} : vector<8x128xbf16>, vector<128x128xbf16>, vector<8x128xf32> -> vector<8x128xf32>
    %37 = arith.addf %33, %36 : vector<8x128xf32>
    %c0_29 = arith.constant 0 : index
    %c0_30 = arith.constant 0 : index
    %38 = vector.load %arg13[%c0_29, %c0_30] : memref<1x128xf32, #tpu.memory_space<vmem>>, vector<1x128xf32>
    %39 = vector.broadcast %38 : vector<1x128xf32> to vector<8x128xf32>
    %40 = arith.addf %37, %39 : vector<8x128xf32>
    %cst_31 = arith.constant 0.000000e+00 : f32
    %41 = vector.broadcast %cst_31 : f32 to vector<8x128xf32>
    %42 = arith.maximumf %40, %41 : vector<8x128xf32>
    %43 = arith.truncf %42 : vector<8x128xf32> to vector<8x128xbf16>
    %c0_32 = arith.constant 0 : index
    %c0_33 = arith.constant 0 : index
    %44 = vector.load %arg14[%c0_32, %c0_33] : memref<128x128xbf16, #tpu.memory_space<vmem>>, vector<128x128xbf16>
    %cst_34 = arith.constant dense<0.000000e+00> : vector<8x128xf32>
    %45 = tpu.matmul %43, %44, %cst_34 {dimension_numbers = #tpu.dot_dimension_numbers<[1], [0], [0], [1], [0, 0, 1, 1], [], []>} : vector<8x128xbf16>, vector<128x128xbf16>, vector<8x128xf32> -> vector<8x128xf32>
    %c0_35 = arith.constant 0 : index
    %c0_36 = arith.constant 0 : index
    %46 = vector.load %arg15[%c0_35, %c0_36] : memref<1x128xf32, #tpu.memory_space<vmem>>, vector<1x128xf32>
    %47 = vector.broadcast %46 : vector<1x128xf32> to vector<8x128xf32>
    %48 = arith.addf %45, %47 : vector<8x128xf32>
    %cst_37 = arith.constant 0.000000e+00 : f32
    %49 = vector.broadcast %cst_37 : f32 to vector<8x128xf32>
    %50 = arith.maximumf %48, %49 : vector<8x128xf32>
    %51 = math.absf %48 : vector<8x128xf32>
    %cst_38 = arith.constant 0.000000e+00 : f32
    %52 = vector.broadcast %cst_38 : f32 to vector<8x128xf32>
    %53 = arith.subf %52, %51 : vector<8x128xf32>
    %54 = math.exp %53 : vector<8x128xf32>
    %55 = math.log1p %54 : vector<8x128xf32>
    %56 = arith.addf %50, %55 : vector<8x128xf32>
    %c0_39 = arith.constant 0 : index
    %c0_40 = arith.constant 0 : index
    %57 = vector.load %arg16[%c0_39, %c0_40] : memref<8x128xf32, #tpu.memory_space<vmem>>, vector<8x128xf32>
    tpu.vector_store %arg16[%c0_39, %c0_40], %56 {strides = array<i32>} : memref<8x128xf32, #tpu.memory_space<vmem>>, vector<8x128xf32>,
    return
  }
  func.func @transform_0(%arg0: i32) -> (i32, i32) {
    %c0_i32 = arith.constant 0 : i32
    %c0_i32_0 = arith.constant 0 : i32
    return %arg0, %c0_i32 : i32, i32
  }
  func.func @transform_1(%arg0: i32) -> (i32, i32) {
    %c0_i32 = arith.constant 0 : i32
    %c0_i32_0 = arith.constant 0 : i32
    return %arg0, %c0_i32 : i32, i32
  }
  func.func @transform_2(%arg0: i32) -> (i32, i32) {
    %c0_i32 = arith.constant 0 : i32
    %c0_i32_0 = arith.constant 0 : i32
    %c0_i32_1 = arith.constant 0 : i32
    return %c0_i32, %c0_i32_0 : i32, i32
  }
  func.func @transform_3(%arg0: i32) -> (i32, i32) {
    %c0_i32 = arith.constant 0 : i32
    %c0_i32_0 = arith.constant 0 : i32
    %c0_i32_1 = arith.constant 0 : i32
    return %c0_i32, %c0_i32_0 : i32, i32
  }
  func.func @transform_4(%arg0: i32) -> (i32, i32) {
    %c0_i32 = arith.constant 0 : i32
    %c0_i32_0 = arith.constant 0 : i32
    %c0_i32_1 = arith.constant 0 : i32
    return %c0_i32, %c0_i32_0 : i32, i32
  }
  func.func @transform_5(%arg0: i32) -> (i32, i32) {
    %c0_i32 = arith.constant 0 : i32
    %c0_i32_0 = arith.constant 0 : i32
    %c0_i32_1 = arith.constant 0 : i32
    return %c0_i32, %c0_i32_0 : i32, i32
  }
  func.func @transform_6(%arg0: i32) -> (i32, i32) {
    %c0_i32 = arith.constant 0 : i32
    %c0_i32_0 = arith.constant 0 : i32
    %c0_i32_1 = arith.constant 0 : i32
    return %c0_i32, %c0_i32_0 : i32, i32
  }
  func.func @transform_7(%arg0: i32) -> (i32, i32) {
    %c0_i32 = arith.constant 0 : i32
    %c0_i32_0 = arith.constant 0 : i32
    %c0_i32_1 = arith.constant 0 : i32
    return %c0_i32, %c0_i32_0 : i32, i32
  }
  func.func @transform_8(%arg0: i32) -> (i32, i32) {
    %c0_i32 = arith.constant 0 : i32
    %c0_i32_0 = arith.constant 0 : i32
    %c0_i32_1 = arith.constant 0 : i32
    return %c0_i32, %c0_i32_0 : i32, i32
  }
  func.func @transform_9(%arg0: i32) -> (i32, i32) {
    %c0_i32 = arith.constant 0 : i32
    %c0_i32_0 = arith.constant 0 : i32
    %c0_i32_1 = arith.constant 0 : i32
    return %c0_i32, %c0_i32_0 : i32, i32
  }
  func.func @transform_10(%arg0: i32) -> (i32, i32) {
    %c0_i32 = arith.constant 0 : i32
    %c0_i32_0 = arith.constant 0 : i32
    %c0_i32_1 = arith.constant 0 : i32
    return %c0_i32, %c0_i32_0 : i32, i32
  }
  func.func @transform_11(%arg0: i32) -> (i32, i32) {
    %c0_i32 = arith.constant 0 : i32
    %c0_i32_0 = arith.constant 0 : i32
    %c0_i32_1 = arith.constant 0 : i32
    return %c0_i32, %c0_i32_0 : i32, i32
  }
  func.func @transform_12(%arg0: i32) -> (i32, i32) {
    %c0_i32 = arith.constant 0 : i32
    %c0_i32_0 = arith.constant 0 : i32
    %c0_i32_1 = arith.constant 0 : i32
    return %c0_i32, %c0_i32_0 : i32, i32
  }
  func.func @transform_13(%arg0: i32) -> (i32, i32) {
    %c0_i32 = arith.constant 0 : i32
    %c0_i32_0 = arith.constant 0 : i32
    %c0_i32_1 = arith.constant 0 : i32
    return %c0_i32, %c0_i32_0 : i32, i32
  }
  func.func @transform_14(%arg0: i32) -> (i32, i32) {
    %c0_i32 = arith.constant 0 : i32
    %c0_i32_0 = arith.constant 0 : i32
    %c0_i32_1 = arith.constant 0 : i32
    return %c0_i32, %c0_i32_0 : i32, i32
  }
  func.func @transform_15(%arg0: i32) -> (i32, i32) {
    %c0_i32 = arith.constant 0 : i32
    %c0_i32_0 = arith.constant 0 : i32
    return %arg0, %c0_i32 : i32, i32
  }
}

</mosaic_0001>

<bundles_post_ra>
// kernel: tpu_custom_call.1
= control target key start
LH: loop header
LB: loop body
LE: loop exit
PB: predicated region body
PF: predicated region fallthrough
CT: control target
= control target key end

     0   :  { %20 = vsyncpa [#allocation3], 0  ;;  %s1467_s0 = inlined_call_operand.vmem [shape: f32[8,16], index: 0, kind: input, shape index: {}]   ;;  %s1468_s1 = inlined_call_operand.vmem [shape: f32[8,1], index: 1, kind: input, shape index: {}]   ;;  %s1469_s2 = inlined_call_operand.vmem [shape: bf16[16,128], index: 2, kind: input, shape index: {}]   ;;  %s1470_s3 = inlined_call_operand.vmem [shape: f32[1,128], index: 3, kind: input, shape index: {}]   ;;  %s1471_s4 = inlined_call_operand.hbm [shape: bf16[128,128], index: 4, kind: input, shape index: {}]   ;;  %s1472_s5 = inlined_call_operand.vmem [shape: f32[1,128], index: 5, kind: input, shape index: {}]   ;;  %s1473_s6 = inlined_call_operand.vmem [shape: f32[1,128], index: 6, kind: input, shape index: {}]   ;;  %s1474_s7 = inlined_call_operand.vmem [shape: f32[1,128], index: 7, kind: input, shape index: {}]   ;;  %s1475_s8 = inlined_call_operand.hbm [shape: bf16[128,128], index: 8, kind: input, shape index: {}]   ;;  %s1476_s9 = inlined_call_operand.vmem [shape: f32[1,128], index: 9, kind: input, shape index: {}]   ;;  %s1477_s10 = inlined_call_operand.hbm [shape: bf16[128,128], index: 10, kind: input, shape index: {}]   ;;  %s1478_s11 = inlined_call_operand.hbm [shape: bf16[128,128], index: 11, kind: input, shape index: {}]   ;;  %s1479_s12 = inlined_call_operand.vmem [shape: f32[1,128], index: 12, kind: input, shape index: {}]   ;;  %s1480_s13 = inlined_call_operand.hbm [shape: bf16[128,128], index: 13, kind: input, shape index: {}]   ;;  %s1481_s14 = inlined_call_operand.vmem [shape: f32[1,128], index: 14, kind: input, shape index: {}]   ;;  %s1482_s15 = inlined_call_operand.hbm [shape: f32[8,128], index: 15, kind: output, shape index: {}]  }
   0x1   :  { %21 = vsyncpa [#allocation6], 0 }
   0x2   :  { %22 = vsyncpa [#allocation9], 0 }
   0x3   :  { %23 = vsyncpa [#allocation4], 0  ;;  %s1192_s18 = smov [#allocation5]   ;;  %s1193_s20 = smov [#allocation8]  }
   0x4   :  { %s55_s19 = sshll.u32 %s1192_s18, 4  ;;  %s81_s21 = sshll.u32 %s1193_s20, 4  ;;  %s56_s19 = int_to_ptr.vmem [resolvable:$true] %s55_s19  ;;  %s1283_s21 = int_to_ptr.vmem [resolvable:$true] %s81_s21 }
   0x5   :  { %s1052_s24 = scalar_lea.hbm %s1475_s8, 1024 }
   0x6   :  { %p1053_p0 = scmp.ne.s32.totalorder %s1475_s8, %s1052_s24  ;;  %p1056_p1 = scmp.lt.u32.totalorder %s1052_s24, %s1475_s8 }
   0x8   :  { %p1058_p2 = pnand %p1056_p1, %p1053_p0 }
   0xa   :  { %1061 = shalt.err (!%p1058_p2)
}
   0xb   :  { %s1062_s29 = scalar_lea.vmem %s56_s19, 1024  ;;  %p1067_p4 = scmp.lt.s32.totalorder %s56_s19, %s56_s19 }
   0xc   :  { %p1063_p3 = scmp.ne.s32.totalorder %s56_s19, %s1062_s29  ;;  %p1068_p5 = scmp.lt.s32.totalorder %s1062_s29, %s1062_s29 }
   0xe   :  { %p1069_p6 = por %p1068_p5, %p1067_p4 }
  0x10   :  { %p1070_p7 = pnand %p1069_p6, %p1063_p3 }
  0x12   :  { %1073 = shalt.err (!%p1070_p7)
}
  0x13   :  { %s1194_s30 = smov 64   ;;  %s1195_s16 = smov 4  }
  0x14   :  { %61 = dma.hbm_to_vmem [thread:$0]  %s1475_s8, 1024, %s56_s19, [#allocation6], %s1194_s30, %s1194_s30, %s1195_s16  }
  0x15   :  { %s1074_s23 = scalar_lea.hbm %s1478_s11, 1024 }
  0x16   :  { %p1075_p8 = scmp.ne.s32.totalorder %s1478_s11, %s1074_s23  ;;  %p1078_p9 = scmp.lt.u32.totalorder %s1074_s23, %s1478_s11 }
  0x18   :  { %p1080_p10 = pnand %p1078_p9, %p1075_p8 }
  0x1a   :  { %1083 = shalt.err (!%p1080_p10)
}
  0x1b   :  { %s1084_s28 = scalar_lea.vmem %s1283_s21, 1024  ;;  %p1089_p12 = scmp.lt.s32.totalorder %s1283_s21, %s1283_s21 }
  0x1c   :  { %p1085_p11 = scmp.ne.s32.totalorder %s1283_s21, %s1084_s28  ;;  %p1090_p13 = scmp.lt.s32.totalorder %s1084_s28, %s1084_s28 }
  0x1e   :  { %p1091_p0 = por %p1090_p13, %p1089_p12 }
  0x20   :  { %p1092_p1 = pnand %p1091_p0, %p1085_p11 }
  0x22   :  { %1095 = shalt.err (!%p1092_p1)
}
  0x23   :  { %87 = dma.hbm_to_vmem [thread:$0]  %s1478_s11, 1024, %s1283_s21, [#allocation9], %s1194_s30, %s1194_s30, %s1195_s16  }
  0x24   :  { %s1196_s29 = smov [#allocation2]   ;;  %s1197_s18 = smov [#allocation7]  }
  0x25   :  { %s37_s17 = sshll.u32 %s1196_s29, 4  ;;  %s69_s20 = sshll.u32 %s1197_s18, 4  ;;  %s38_s17 = int_to_ptr.vmem [resolvable:$true] %s37_s17  ;;  %s1320_s20 = int_to_ptr.vmem [resolvable:$true] %s69_s20 }
  0x26   :  { %s1096_s24 = scalar_lea.hbm %s1471_s4, 1024 }
  0x27   :  { %p1097_p2 = scmp.ne.s32.totalorder %s1471_s4, %s1096_s24  ;;  %p1100_p3 = scmp.lt.u32.totalorder %s1096_s24, %s1471_s4 }
  0x29   :  { %p1102_p4 = pnand %p1100_p3, %p1097_p2 }
  0x2b   :  { %1105 = shalt.err (!%p1102_p4)
}
  0x2c   :  { %s1106_s11 = scalar_lea.vmem %s38_s17, 1024  ;;  %p1111_p6 = scmp.lt.s32.totalorder %s38_s17, %s38_s17 }
  0x2d   :  { %p1107_p5 = scmp.ne.s32.totalorder %s38_s17, %s1106_s11  ;;  %p1112_p7 = scmp.lt.s32.totalorder %s1106_s11, %s1106_s11 }
  0x2f   :  { %p1113_p8 = por %p1112_p7, %p1111_p6 }
  0x31   :  { %p1114_p9 = pnand %p1113_p8, %p1107_p5 }
  0x33   :  { %1117 = shalt.err (!%p1114_p9)
}
  0x34   :  { %43 = dma.hbm_to_vmem [thread:$0]  %s1471_s4, 1024, %s38_s17, [#allocation3], %s1194_s30, %s1194_s30, %s1195_s16  }
  0x35   :  { %s1118_s18 = scalar_lea.hbm %s1477_s10, 1024 }
  0x36   :  { %p1119_p10 = scmp.ne.s32.totalorder %s1477_s10, %s1118_s18  ;;  %p1122_p11 = scmp.lt.u32.totalorder %s1118_s18, %s1477_s10 }
  0x38   :  { %p1124_p12 = pnand %p1122_p11, %p1119_p10 }
  0x3a   :  { %1127 = shalt.err (!%p1124_p12)
}
  0x3b   :  { %s1128_s26 = scalar_lea.vmem %s1320_s20, 1024  ;;  %p1133_p0 = scmp.lt.s32.totalorder %s1320_s20, %s1320_s20 }
  0x3c   :  { %p1129_p13 = scmp.ne.s32.totalorder %s1320_s20, %s1128_s26  ;;  %p1134_p1 = scmp.lt.s32.totalorder %s1128_s26, %s1128_s26 }
  0x3e   :  { %p1135_p2 = por %p1134_p1, %p1133_p0 }
  0x40   :  { %p1136_p3 = pnand %p1135_p2, %p1129_p13 }
  0x42   :  { %1139 = shalt.err (!%p1136_p3)
}
  0x43   :  { %75 = dma.hbm_to_vmem [thread:$0]  %s1477_s10, 1024, %s1320_s20, [#allocation6], %s1194_s30, %s1194_s30, %s1195_s16  }
  0x44   :  { %s1198_s27 = smov [#allocation10]   ;;  %s1140_s8 = scalar_lea.hbm %s1480_s13, 1024 }
  0x45   :  { %s95_s28 = sshll.u32 %s1198_s27, 4  ;;  %p1141_p4 = scmp.ne.s32.totalorder %s1480_s13, %s1140_s8  ;;  %s96_s28 = int_to_ptr.vmem [resolvable:$true] %s95_s28 }
  0x46   :  { %p1144_p5 = scmp.lt.u32.totalorder %s1140_s8, %s1480_s13 }
  0x48   :  { %p1146_p6 = pnand %p1144_p5, %p1141_p4 }
  0x4a   :  { %1149 = shalt.err (!%p1146_p6)
}
  0x4b   :  { %s1150_s23 = scalar_lea.vmem %s96_s28, 1024  ;;  %p1155_p8 = scmp.lt.s32.totalorder %s96_s28, %s96_s28 }
  0x4c   :  { %p1151_p7 = scmp.ne.s32.totalorder %s96_s28, %s1150_s23  ;;  %p1156_p9 = scmp.lt.s32.totalorder %s1150_s23, %s1150_s23 }
  0x4e   :  { %p1157_p10 = por %p1156_p9, %p1155_p8 }
  0x50   :  { %p1158_p11 = pnand %p1157_p10, %p1151_p7 }
  0x52   :  { %1161 = shalt.err (!%p1158_p11)
}
  0x53   :  { %101 = dma.hbm_to_vmem [thread:$0]  %s1480_s13, 1024, %s96_s28, [#allocation9], %s1194_s30, %s1194_s30, %s1195_s16  }
  0x54   :  { %1184 = dma.done.wait [#allocation3], 1024  }
  0x55   :  { %1185 = vsyncadd [#allocation3], 4294966272 }
  0x56   :  { %1186 = dma.done.wait [#allocation6], 2048  }
  0x57   :  { %1187 = vsyncadd [#allocation6], 4294965248 }
  0x58   :  { %1188 = dma.done.wait [#allocation9], 2048  }
  0x59   :  { %1189 = vsyncadd [#allocation9], 4294965248  ;;  %v1199_v0 = vmov 0.0   ;;  %vm1200_vm0 = vmmov 0   ;;  %v1201_v1 = vmov 0   ;;  %v1007_v2 = vld [vmem:[%s1469_s2] sm:$0xff]  }
  0x5a   :  { %889 = vmatprep.subr.bf16.mxu0 %v1199_v0  ;;  %891 = vmatprep.mubr.msk.bf16.mxu0 %vm1200_vm0, %v1199_v0  ;;  %v120_v3 = vld [vmem:[%s1467_s0] sm:$0xff]  ;;  %vm137_vm1 = vcmask 130048   ;;  %v1011_v8 = vld [vmem:[#allocation2 + $0x8] sm:$0xff]   ;;  %v1013_v10 = vld [vmem:[#allocation2 + $0x10] sm:$0xff]  }
  0x5b   :  { %1006 = vset.pattern.permute.xlu0 %v1201_v1  ;;  %895 = vmatprep.subr.bf16.mxu1 %v1199_v0  ;;  %v296_v4 = vld [vmem:[%s1468_s1] sm:$0xff]  ;;  %v121_v5 = vpack.c.bf16 %v120_v3, %v120_v3  ;;  %v1010_v9 = vld [vmem:[#allocation5 + $0x8] sm:$0xff]   ;;  %v1012_v11 = vld [vmem:[#allocation5 + $0x10] sm:$0xff]  }
  0x5c   :  { %911 = vmatprep.mubr.msk.bf16.mxu1 %vm1200_vm0, %v1199_v0  ;;  %890 = vmatpush3.bf16.msra.mxu0 %v1007_v2  ;;  %v1008_v6 = vld [vmem:[#allocation5] sm:$0xff]   ;;  %v1015_v12 = vld [vmem:[#allocation2 + $0x18] sm:$0xff]   ;;  %v1019_v16 = vld [vmem:[#allocation2 + $0x28] sm:$0xff]  }
  0x5d   :  { %299 = vperm.xlu0 %1006, %v296_v4   ;;  %915 = vmatprep.subr.bf16.mxu0 %v1199_v0  ;;  %v1009_v7 = vld [vmem:[#allocation2] sm:$0xff]   ;;  %v1014_v13 = vld [vmem:[#allocation5 + $0x18] sm:$0xff]   ;;  %v1018_v17 = vld [vmem:[#allocation5 + $0x28] sm:$0xff]  }
  0x5e   :  { %896 = vmatpush3.bf16.msra.mxu1 %v1009_v7  ;;  %v1017_v14 = vld [vmem:[#allocation2 + $0x20] sm:$0xff]   ;;  %v1020_v18 = vld [vmem:[#allocation5 + $0x30] sm:$0xff]   ;;  %v1022_v20 = vld [vmem:[#allocation5 + $0x38] sm:$0xff]  }
  0x5f   :  { %892 = vmatmul.mubr.msk.bf16.vlgmr.msra.gmra.mrb[0].mxu0 %vm137_vm1, %v121_v5  ;;  %897 = vmatprep.subr.bf16.mxu1 %v1199_v0  ;;  %v1016_v15 = vld [vmem:[#allocation5 + $0x20] sm:$0xff]   ;;  %v1021_v19 = vld [vmem:[#allocation2 + $0x30] sm:$0xff]   ;;  %v1023_v21 = vld [vmem:[#allocation2 + $0x38] sm:$0xff]  }
  0x60   :  { %916 = vmatpush3.bf16.msra.mxu0 %v1008_v6  ;;  %931 = vmatprep.mubr.msk.bf16.mxu0 %vm1200_vm0, %v1199_v0  ;;  %v805_v22 = vld [vmem:[%s1473_s6] ss:$0 sm:$0xff]  ;;  %v1027_v30 = vld [vmem:[#allocation7 + $0x8] sm:$0xff]   ;;  %v1029_v31 = vld [vmem:[#allocation7 + $0x10] sm:$0xff]  }
  0x61   :  { %917 = vmatprep.subr.bf16.mxu0 %v1199_v0  ;;  %v806_v24 = vld [vmem:[%s1474_s7] ss:$0 sm:$0xff]  ;;  %v1031_v32 = vld [vmem:[#allocation7 + $0x18] sm:$0xff]   ;;  %v1035_v34 = vld [vmem:[#allocation7 + $0x28] sm:$0xff]  }
  0x62   :  { %898 = vmatpush3.bf16.msra.mxu1 %v1011_v8  ;;  %v1025_v28 = vld [vmem:[#allocation7] sm:$0xff]   ;;  %v1026_v44 = vld [vmem:[#allocation8 + $0x8] sm:$0xff]   ;;  %v1037_v45 = vld [vmem:[#allocation7 + $0x30] sm:$0xff]  }
  0x63   :  { %899 = vmatprep.subr.bf16.mxu1 %v1199_v0  ;;  %v1033_v33 = vld [vmem:[#allocation7 + $0x20] sm:$0xff]   ;;  %v1028_v46 = vld [vmem:[#allocation8 + $0x10] sm:$0xff]   ;;  %v1030_v47 = vld [vmem:[#allocation8 + $0x18] sm:$0xff]  }
  0x64   :  { %918 = vmatpush3.bf16.msra.mxu0 %v1010_v9  ;;  %v793_v35 = vld [vmem:[%s1470_s3] ss:$0 sm:$0xff]  ;;  %v1034_v49 = vld [vmem:[#allocation8 + $0x28] sm:$0xff]   ;;  %v1036_v50 = vld [vmem:[#allocation8 + $0x30] sm:$0xff]  }
  0x65   :  { %919 = vmatprep.subr.bf16.mxu0 %v1199_v0  ;;  %v1024_v42 = vld [vmem:[#allocation8] sm:$0xff]   ;;  %v1038_v51 = vld [vmem:[#allocation8 + $0x38] sm:$0xff]   ;;  %v1041_v61 = vld [vmem:[#allocation10 + $0x8] sm:$0xff]  }
  0x66   :  { %900 = vmatpush3.bf16.msra.mxu1 %v1013_v10  ;;  %v1032_v48 = vld [vmem:[#allocation8 + $0x20] sm:$0xff]   ;;  %v1039_v52 = vld [vmem:[#allocation7 + $0x38] sm:$0xff]   ;;  %v1042_v62 = vld [vmem:[#allocation10 + $0x10] sm:$0xff]  }
  0x67   :  { %901 = vmatprep.subr.bf16.mxu1 %v1199_v0  ;;  %v807_v53 = vld [vmem:[%s1476_s9] ss:$0 sm:$0xff]  ;;  %v1043_v63 = vld [vmem:[#allocation10 + $0x18] sm:$0xff]   ;;  %v1045_v9 = vld [vmem:[#allocation10 + $0x28] sm:$0xff]  }
  0x68   :  { %920 = vmatpush3.bf16.msra.mxu0 %v1012_v11  ;;  %v1040_v58 = vld [vmem:[#allocation10] sm:$0xff]   ;;  %v1046_v10 = vld [vmem:[#allocation10 + $0x30] sm:$0xff]   ;;  %v1047_v11 = vld [vmem:[#allocation10 + $0x38] sm:$0xff]  }
  0x69   :  { %921 = vmatprep.subr.bf16.mxu0 %v1199_v0  ;;  %v1044_v1 = vld [vmem:[#allocation10 + $0x20] sm:$0xff]  }
  0x6a   :  { %902 = vmatpush3.bf16.msra.mxu1 %v1015_v12  ;;  %v796_v2 = vld [vmem:[%s1472_s5] ss:$0 sm:$0xff] }
  0x6b   :  { %903 = vmatprep.subr.bf16.mxu1 %v1199_v0 }
  0x6c   :  { %922 = vmatpush3.bf16.msra.mxu0 %v1014_v13 }
  0x6d   :  { %923 = vmatprep.subr.bf16.mxu0 %v1199_v0 }
  0x6e   :  { %904 = vmatpush3.bf16.msra.mxu1 %v1017_v14 }
  0x6f   :  { %905 = vmatprep.subr.bf16.mxu1 %v1199_v0 }
  0x70   :  { %924 = vmatpush3.bf16.msra.mxu0 %v1016_v15 }
  0x71   :  { %925 = vmatprep.subr.bf16.mxu0 %v1199_v0 }
  0x72   :  { %906 = vmatpush3.bf16.msra.mxu1 %v1019_v16 }
  0x73   :  { %907 = vmatprep.subr.bf16.mxu1 %v1199_v0 }
  0x74   :  { %926 = vmatpush3.bf16.msra.mxu0 %v1018_v17  ;;  %v832_v17 = vld [vmem:[%s1479_s12] ss:$0 sm:$0xff]  ;;  %s1202_s12 = smov [#allocation11]  }
  0x75   :  { %927 = vmatprep.subr.bf16.mxu0 %v1199_v0 }
  0x76   :  { %908 = vmatpush3.bf16.msra.mxu1 %v1021_v19 }
  0x77   :  { %909 = vmatprep.subr.bf16.mxu1 %v1199_v0 }
  0x78   :  { %928 = vmatpush3.bf16.msra.mxu0 %v1020_v18 }
  0x79   :  { %929 = vmatprep.subr.bf16.mxu0 %v1199_v0 }
  0x7a   :  { %910 = vmatpush3.bf16.msra.mxu1 %v1023_v21 }
  0x7b   :  { %935 = vmatprep.subr.bf16.mxu1 %v1199_v0 }
  0x7c   :  { %930 = vmatpush3.bf16.msra.mxu0 %v1022_v20 }
  0x7d   :  { %955 = vmatprep.subr.bf16.mxu0 %v1199_v0 }
  0xdc   :  { %v300_v23 = vpop.permute.xlu0 %299 }
  0xdd   :  { %v308_v25 = vmul.f32 %v805_v22, %v300_v23 }
  0xdf   :  { %v315_v26 = vadd.f32 %v806_v24, %v308_v25 }
  0xe1   :  { %v316_v27 = vmax.f32 %v315_v26, 0.0 }
  0xe3   :  { %v317_v29 = vpack.c.bf16 %v316_v27, %v316_v27 }
  0xe5   :  { %932 = vmatmul.mubr.bf16.vlgmr.msra.gmra.mrb[4].mxu0 %v317_v29 }
  0xe6   :  { %956 = vmatpush3.bf16.msra.mxu0 %v1025_v28  ;;  %971 = vmatprep.mubr.msk.bf16.mxu0 %vm1200_vm0, %v1199_v0 }
  0xe7   :  { %957 = vmatprep.subr.bf16.mxu0 %v1199_v0 }
  0xea   :  { %958 = vmatpush3.bf16.msra.mxu0 %v1027_v30 }
  0xeb   :  { %959 = vmatprep.subr.bf16.mxu0 %v1199_v0 }
  0xee   :  { %960 = vmatpush3.bf16.msra.mxu0 %v1029_v31 }
  0xef   :  { %961 = vmatprep.subr.bf16.mxu0 %v1199_v0 }
  0xf2   :  { %962 = vmatpush3.bf16.msra.mxu0 %v1031_v32 }
  0xf3   :  { %963 = vmatprep.subr.bf16.mxu0 %v1199_v0 }
  0xf6   :  { %964 = vmatpush3.bf16.msra.mxu0 %v1033_v33 }
  0xf7   :  { %965 = vmatprep.subr.bf16.mxu0 %v1199_v0 }
  0xfa   :  { %966 = vmatpush3.bf16.msra.mxu0 %v1035_v34 }
  0xfb   :  { %967 = vmatprep.subr.bf16.mxu0 %v1199_v0 }
  0xfe   :  { %968 = vmatpush3.bf16.msra.mxu0 %v1037_v45 }
  0xff   :  { %969 = vmatprep.subr.bf16.mxu0 %v1199_v0 }
 0x102   :  { %970 = vmatpush3.bf16.msra.mxu0 %v1039_v52 }
 0x132   :  { %v175_v36 = vpop.f32.mrb[0].mxu0 }
 0x133   :  { %v176_v37 = vadd.f32 %v793_v35, %v175_v36  ;;  %v893_v38 = vpop.f32.mrb[1].mxu0 }
 0x134   :  { %v178_v39 = vpop.f32.mrb[2].mxu0 }
 0x135   :  { %v181_v40 = vmax.f32 %v176_v37, 0.0  ;;  %v894_v41 = vpop.f32.mrb[3].mxu0 }
 0x137   :  { %v182_v43 = vpack.c.bf16 %v181_v40, %v181_v40 }
 0x139   :  { %912 = vmatmul.mubr.bf16.vlgmr.msra.gmra.mrb[0].mxu1 %v182_v43 }
 0x13a   :  { %936 = vmatpush3.bf16.msra.mxu1 %v1024_v42  ;;  %951 = vmatprep.mubr.msk.bf16.mxu1 %vm1200_vm0, %v1199_v0 }
 0x13b   :  { %937 = vmatprep.subr.bf16.mxu1 %v1199_v0 }
 0x13e   :  { %938 = vmatpush3.bf16.msra.mxu1 %v1026_v44 }
 0x13f   :  { %939 = vmatprep.subr.bf16.mxu1 %v1199_v0 }
 0x142   :  { %940 = vmatpush3.bf16.msra.mxu1 %v1028_v46 }
 0x143   :  { %941 = vmatprep.subr.bf16.mxu1 %v1199_v0 }
 0x146   :  { %942 = vmatpush3.bf16.msra.mxu1 %v1030_v47 }
 0x147   :  { %943 = vmatprep.subr.bf16.mxu1 %v1199_v0 }
 0x14a   :  { %944 = vmatpush3.bf16.msra.mxu1 %v1032_v48 }
 0x14b   :  { %945 = vmatprep.subr.bf16.mxu1 %v1199_v0 }
 0x14e   :  { %946 = vmatpush3.bf16.msra.mxu1 %v1034_v49 }
 0x14f   :  { %947 = vmatprep.subr.bf16.mxu1 %v1199_v0 }
 0x152   :  { %948 = vmatpush3.bf16.msra.mxu1 %v1036_v50 }
 0x153   :  { %949 = vmatprep.subr.bf16.mxu1 %v1199_v0 }
 0x156   :  { %950 = vmatpush3.bf16.msra.mxu1 %v1038_v51 }
 0x157   :  { %975 = vmatprep.subr.bf16.mxu1 %v1199_v0 }
 0x1b8   :  { %v423_v54 = vpop.f32.mrb[4].mxu0 }
 0x1b9   :  { %v424_v55 = vadd.f32 %v807_v53, %v423_v54  ;;  %v933_v56 = vpop.f32.mrb[5].mxu0 }
 0x1ba   :  { %v426_v57 = vpop.f32.mrb[6].mxu0 }
 0x1bb   :  { %v446_v59 = vpack.c.bf16 %v424_v55, %v424_v55  ;;  %v934_v60 = vpop.f32.mrb[7].mxu0 }
 0x1bd   :  { %952 = vmatmul.mubr.bf16.vlgmr.msra.gmra.mrb[4].mxu1 %v446_v59 }
 0x1be   :  { %976 = vmatpush3.bf16.msra.mxu1 %v1040_v58  ;;  %991 = vmatprep.mubr.msk.bf16.mxu1 %vm1200_vm0, %v1199_v0 }
 0x1bf   :  { %977 = vmatprep.subr.bf16.mxu1 %v1199_v0 }
 0x1c2   :  { %978 = vmatpush3.bf16.msra.mxu1 %v1041_v61 }
 0x1c3   :  { %979 = vmatprep.subr.bf16.mxu1 %v1199_v0 }
 0x1c6   :  { %980 = vmatpush3.bf16.msra.mxu1 %v1042_v62 }
 0x1c7   :  { %981 = vmatprep.subr.bf16.mxu1 %v1199_v0 }
 0x1ca   :  { %982 = vmatpush3.bf16.msra.mxu1 %v1043_v63 }
 0x1cb   :  { %983 = vmatprep.subr.bf16.mxu1 %v1199_v0 }
 0x1ce   :  { %984 = vmatpush3.bf16.msra.mxu1 %v1044_v1 }
 0x1cf   :  { %985 = vmatprep.subr.bf16.mxu1 %v1199_v0 }
 0x1d2   :  { %986 = vmatpush3.bf16.msra.mxu1 %v1045_v9 }
 0x1d3   :  { %987 = vmatprep.subr.bf16.mxu1 %v1199_v0 }
 0x1d6   :  { %988 = vmatpush3.bf16.msra.mxu1 %v1046_v10 }
 0x1d7   :  { %989 = vmatprep.subr.bf16.mxu1 %v1199_v0  ;;  %v833_v0 = vld [vmem:[%s1481_s14] ss:$0 sm:$0xff]  ;;  %s782_s14 = sshll.u32 %s1202_s12, 4  ;;  %s783_s14 = int_to_ptr.vmem [resolvable:$true] %s782_s14 }
 0x1d8   :  { %s1162_s8 = scalar_lea.vmem %s783_s14, 128  ;;  %p1167_p13 = scmp.lt.s32.totalorder %s783_s14, %s783_s14 }
 0x1d9   :  { %p1163_p12 = scmp.ne.s32.totalorder %s783_s14, %s1162_s8  ;;  %p1168_p0 = scmp.lt.s32.totalorder %s1162_s8, %s1162_s8 }
 0x1da   :  { %990 = vmatpush3.bf16.msra.mxu1 %v1047_v11 }
 0x1db   :  { %p1169_p1 = por %p1168_p0, %p1167_p13 }
 0x1dd   :  { %p1170_p2 = pnand %p1169_p1, %p1163_p12 }
 0x20c   :  { %v288_v3 = vpop.f32.mrb[0].mxu1 }
 0x20d   :  { %v289_v4 = vadd.f32 %v796_v2, %v288_v3  ;;  %v913_v5 = vpop.f32.mrb[1].mxu1 }
 0x20e   :  { %v291_v6 = vpop.f32.mrb[2].mxu1 }
 0x20f   :  { %v429_v7 = vpack.c.bf16 %v289_v4, %v289_v4  ;;  %v914_v8 = vpop.f32.mrb[3].mxu1 }
 0x211   :  { %972 = vmatmul.mubr.bf16.vlgmr.msra.gmra.mrb[8].mxu0 %v429_v7 }
 0x290   :  { %v545_v12 = vpop.f32.mrb[4].mxu1 }
 0x291   :  { %v953_v13 = vpop.f32.mrb[5].mxu1 }
 0x292   :  { %v548_v14 = vpop.f32.mrb[6].mxu1 }
 0x293   :  { %v954_v15 = vpop.f32.mrb[7].mxu1 }
 0x2e4   :  { %v633_v16 = vpop.f32.mrb[8].mxu0 }
 0x2e5   :  { %v634_v18 = vadd.f32 %v633_v16, %v545_v12  ;;  %v973_v19 = vpop.f32.mrb[9].mxu0 }
 0x2e6   :  { %v636_v20 = vpop.f32.mrb[10].mxu0 }
 0x2e7   :  { %v646_v21 = vadd.f32 %v832_v17, %v634_v18  ;;  %v974_v22 = vpop.f32.mrb[11].mxu0 }
 0x2e9   :  { %v647_v23 = vmax.f32 %v646_v21, 0.0 }
 0x2eb   :  { %v648_v24 = vpack.c.bf16 %v647_v23, %v647_v23 }
 0x2ed   :  { %992 = vmatmul.mubr.bf16.vlgmr.msra.gmra.mrb[8].mxu1 %v648_v24 }
 0x3c0   :  { %v754_v25 = vpop.f32.mrb[8].mxu1 }
 0x3c1   :  { %v755_v26 = vadd.f32 %v833_v0, %v754_v25  ;;  %v993_v27 = vpop.f32.mrb[9].mxu1 }
 0x3c2   :  { %v757_v28 = vpop.f32.mrb[10].mxu1 }
 0x3c3   :  { %v761_v29 = vand.u32 2147483647, %v755_v26  ;;  %v994_v30 = vpop.f32.mrb[11].mxu1  ;;  %v760_v41 = vmax.f32 %v755_v26, 0.0 }
 0x3c5   :  { %v762_v31 = vsub.f32 0.0, %v761_v29 }
 0x3c7   :  { %v763_v32 = vmul.f32 1.442695, %v762_v31 }
 0x3c9   :  { %1048 = vpow2.f32 %v763_v32 }
 0x3d3   :  { %v1049_v33 = vpop.eup %1048 }
 0x3d4   :  { %v765_v34 = vadd.f32 1.0, %v1049_v33  ;;  %v768_v35 = vmul.f32 -0.5, %v1049_v33  ;;  %v771_v37 = vand.u32 2147483647, %v1049_v33 }
 0x3d6   :  { %1050 = vlog2.f32 %v765_v34  ;;  %v769_v36 = vadd.f32 1.0, %v768_v35  ;;  %vm772_vm2 = vcmp.lt.f32.partialorder %v771_v37, 0.0004427343 }
 0x3d8   :  { %v770_v40 = vmul.f32 %v1049_v33, %v769_v36 }
 0x3e0   :  { %v1051_v38 = vpop.eup %1050 }
 0x3e1   :  { %v767_v39 = vmul.f32 0.6931472, %v1051_v38 }
 0x3e3   :  { %v773_v42 = vsel %vm772_vm2, %v770_v40, %v767_v39 }
 0x3e4   :  { %v774_v43 = vadd.f32 %v773_v42, %v760_v41 }
 0x3e6   :  { %775 = vst [vmem:[#allocation11] sm:$0xff] %v774_v43 }
 0x3e7   :  { %1173 = shalt.err (!%p1170_p2)
}
 0x3e8   :  { %s1174_s18 = scalar_lea.hbm %s1482_s15, 128 }
 0x3e9   :  { %p1175_p3 = scmp.ne.s32.totalorder %s1482_s15, %s1174_s18  ;;  %p1178_p4 = scmp.lt.u32.totalorder %s1174_s18, %s1482_s15 }
 0x3eb   :  { %p1180_p5 = pnand %p1178_p4, %p1175_p3 }
 0x3ed   :  { %1183 = shalt.err (!%p1180_p5)
}
 0x3ee   :  { %785 = dma.vmem_to_hbm [thread:$0]  %s783_s14, 128, %s1482_s15, [#allocation4]  }
 0x3ef   :  { %1190 = dma.done.wait [#allocation4], 128  }
 0x3f0   :  { %1191 = vsyncadd [#allocation4], 4294967168 }
 0x3f1   :  { %789 = vsyncpa [#allocation3], 1 }
 0x3f2   :  { %790 = vsyncpa [#allocation6], 1 }
 0x3f3   :  { %791 = vsyncpa [#allocation9], 1 }
 0x3f4   :  { %792 = vsyncpa [#allocation4], 1 }

</bundles_post_ra>
